<compile_context>
chip_gen: v6e
topology: v6e:2x2x1
jax: 0.10.0
libtpu: 0.0.40
codegen_flags: <defaults>
</compile_context>

<pallas_src>
import numpy as np
import jax
import jax.numpy as jnp
from jax import lax
from jax.experimental import pallas as pl
from jax.experimental.pallas import tpu as pltpu


# ---------------------------------------------------------------------------
# Helpers.
# ---------------------------------------------------------------------------
def _round_up(x, m):
    return ((x + m - 1) // m) * m


def _pick_tile(target, total, align=128):
    """Largest multiple of `align` that is <= target and divides `total`.
    (`total` is itself a multiple of `align`, so 128 always works.)"""
    t = max(align, min(target, total))
    t = (t // align) * align
    while total % t:
        t -= align
    return t


def _vmem_limit_bytes():
    """Generation-aware VMEM budget: 3/4 of physical per-core VMEM, capped at 96 MiB.
    v5e/v6e (128 MiB/core) -> 96 MiB; v7x (64 MiB/core) -> 48 MiB."""
    try:
        cap = int(pltpu.get_tpu_info().vmem_capacity_bytes)
    except Exception:
        cap = 64 << 20  # conservative (v7x-sized) fallback
    return int(min(cap * 3 // 4, 96 << 20))


def _select_tiles(vmem_limit):
    """Generation-aware tile targets (clamped to the padded problem size later)."""
    if vmem_limit <= (56 << 20):
        # v7x-class budget (~48 MiB usable).
        return dict(tm=512, tk=1024, dec_i=256, dec_j=1024)
    # v5e / v6e class budget (~96 MiB usable).
    return dict(tm=512, tk=2048, dec_i=512, dec_j=2048)


def _pad2(a, shape, dtype):
    """Zero-pad a 2-D array to `shape` in `dtype`; no-op copy avoided if aligned."""
    dtype = jnp.dtype(dtype)
    if tuple(a.shape) == tuple(shape) and a.dtype == dtype:
        return a
    return jnp.zeros(shape, dtype).at[: a.shape[0], : a.shape[1]].set(a.astype(dtype))


# ---------------------------------------------------------------------------
# Fused single-kernel path (small problems: everything resident in VMEM).
# ---------------------------------------------------------------------------
def _gae_fused_kernel(x_ref, adj_ref, w1_ref, w2_ref, out_ref):
    mm_dtype = x_ref.dtype  # MXU operand dtype; accumulation stays f32.
    x = x_ref[...]
    adj = adj_ref[...]

    # base_gcn: relu(adj @ (x @ W1))
    xw1 = jnp.dot(x, w1_ref[...], preferred_element_type=jnp.float32).astype(mm_dtype)
    h = jnp.maximum(jnp.dot(adj, xw1, preferred_element_type=jnp.float32), 0.0)

    # gcn_mean: adj @ (h @ W2)   (identity activation)
    hw2 = jnp.dot(h.astype(mm_dtype), w2_ref[...],
                  preferred_element_type=jnp.float32).astype(mm_dtype)
    z = jnp.dot(adj, hw2, preferred_element_type=jnp.float32).astype(mm_dtype)

    # dot_product_decode: sigmoid(Z @ Z.T) -- contract the last axis of both
    # operands; no transpose is materialized.
    s = lax.dot_general(z, z, dimension_numbers=(((1,), (1,)), ((), ())),
                        preferred_element_type=jnp.float32)
    out_ref[...] = jax.nn.sigmoid(s).astype(out_ref.dtype)


def _gae_fused(xp, adjp, w1p, w2p, *, vmem_limit, out_dtype):
    n_pad = adjp.shape[0]
    return pl.pallas_call(
        _gae_fused_kernel,
        out_shape=jax.ShapeDtypeStruct((n_pad, n_pad), out_dtype),
        in_specs=[
            pl.BlockSpec(xp.shape, lambda: (0, 0)),
            pl.BlockSpec(adjp.shape, lambda: (0, 0)),
            pl.BlockSpec(w1p.shape, lambda: (0, 0)),
            pl.BlockSpec(w2p.shape, lambda: (0, 0)),
        ],
        out_specs=pl.BlockSpec((n_pad, n_pad), lambda: (0, 0)),
        compiler_params=pltpu.CompilerParams(vmem_limit_bytes=vmem_limit),
    )(xp, adjp, w1p, w2p)


# ---------------------------------------------------------------------------
# Tiled, K-tiled multi-kernel path (VMEM footprint independent of N).
# ---------------------------------------------------------------------------
def _dense_rows_kernel(x_ref, w_ref, o_ref, acc_ref):
    """o_i = x_i @ W over a (row-tile, k-tile) grid with an f32 accumulator."""
    @pl.when(pl.program_id(1) == 0)
    def _():
        acc_ref[...] = jnp.zeros_like(acc_ref)

    acc_ref[...] += jnp.dot(x_ref[...], w_ref[...],
                            preferred_element_type=jnp.float32)

    @pl.when(pl.program_id(1) == pl.num_programs(1) - 1)
    def _():
        o_ref[...] = acc_ref[...].astype(o_ref.dtype)


def _spmm_relu_w2_kernel(adj_ref, xw1_ref, w2_ref, o_ref, acc_ref):
    """o_i = relu(adj_i @ XW1) @ W2 -- fuses the second dense matmul into the
    first SpMM's finalize step (tiny W2 stays resident in VMEM)."""
    @pl.when(pl.program_id(1) == 0)
    def _():
        acc_ref[...] = jnp.zeros_like(acc_ref)

    acc_ref[...] += jnp.dot(adj_ref[...], xw1_ref[...],
                            preferred_element_type=jnp.float32)

    @pl.when(pl.program_id(1) == pl.num_programs(1) - 1)
    def _():
        h = jnp.maximum(acc_ref[...], 0.0)                        # f32 ReLU
        hw2 = jnp.dot(h.astype(w2_ref.dtype), w2_ref[...],
                      preferred_element_type=jnp.float32)
        o_ref[...] = hw2.astype(o_ref.dtype)


def _spmm_kernel(adj_ref, xw_ref, o_ref, acc_ref):
    """o_i = adj_i @ XW (identity activation), K-tiled with f32 accumulator."""
    @pl.when(pl.program_id(1) == 0)
    def _():
        acc_ref[...] = jnp.zeros_like(acc_ref)

    acc_ref[...] += jnp.dot(adj_ref[...], xw_ref[...],
                            preferred_element_type=jnp.float32)

    @pl.when(pl.program_id(1) == pl.num_programs(1) - 1)
    def _():
        o_ref[...] = acc_ref[...].astype(o_ref.dtype)


def _decode_kernel(zi_ref, zj_ref, o_ref):
    """o_{ij} = sigmoid(Z_i @ Z_j^T) without materializing a transpose."""
    s = lax.dot_general(zi_ref[...], zj_ref[...],
                        dimension_numbers=(((1,), (1,)), ((), ())),
                        preferred_element_type=jnp.float32)
    o_ref[...] = jax.nn.sigmoid(s).astype(o_ref.dtype)


def _gae_tiled(xp, adjp, w1p, w2p, *, tiles, vmem_limit, mm_dtype, out_dtype):
    n_pad, f_pad = xp.shape
    h1_pad = w1p.shape[1]
    h2_pad = w2p.shape[1]

    tm = _pick_tile(tiles["tm"], n_pad)
    tk_f = _pick_tile(tiles["tk"], f_pad)     # contraction tile over feature axis
    tk_n = _pick_tile(tiles["tk"], n_pad)     # contraction tile over node axis
    dec_i = _pick_tile(tiles["dec_i"], n_pad)
    dec_j = _pick_tile(tiles["dec_j"], n_pad)

    cp_acc = pltpu.CompilerParams(dimension_semantics=("parallel", "arbitrary"),
                                  vmem_limit_bytes=vmem_limit)
    cp_dec = pltpu.CompilerParams(dimension_semantics=("parallel", "parallel"),
                                  vmem_limit_bytes=vmem_limit)

    # Stage 1: XW1 = X @ W1  (K-tiled over the feature axis).
    xw1 = pl.pallas_call(
        _dense_rows_kernel,
        out_shape=jax.ShapeDtypeStruct((n_pad, h1_pad), mm_dtype),
        grid=(n_pad // tm, f_pad // tk_f),
        in_specs=[pl.BlockSpec((tm, tk_f), lambda i, k: (i, k)),
                  pl.BlockSpec((tk_f, h1_pad), lambda i, k: (k, 0))],
        out_specs=pl.BlockSpec((tm, h1_pad), lambda i, k: (i, 0)),
        scratch_shapes=[pltpu.VMEM((tm, h1_pad), jnp.float32)],
        compiler_params=cp_acc,
    )(xp, w1p)

    # Stage 2 (fused): HW2 = relu(adj @ XW1) @ W2  (K-tiled over the node axis).
    # TODO(synk): skip all-zero adj tiles via scalar-prefetched block-sparsity metadata.
    # NOTE: if profiling shows exposed DMA on the adj stream, sweep
    #       pipeline_mode=pl.Buffered(3) on the adj BlockSpec.
    hw2 = pl.pallas_call(
        _spmm_relu_w2_kernel,
        out_shape=jax.ShapeDtypeStruct((n_pad, h2_pad), mm_dtype),
        grid=(n_pad // tm, n_pad // tk_n),
        in_specs=[pl.BlockSpec((tm, tk_n), lambda i, k: (i, k)),
                  pl.BlockSpec((tk_n, h1_pad), lambda i, k: (k, 0)),
                  pl.BlockSpec((h1_pad, h2_pad), lambda i, k: (0, 0))],
        out_specs=pl.BlockSpec((tm, h2_pad), lambda i, k: (i, 0)),
        scratch_shapes=[pltpu.VMEM((tm, h1_pad), jnp.float32)],
        compiler_params=cp_acc,
    )(adjp, xw1, w2p)

    # Stage 3: Z = adj @ HW2  (K-tiled over the node axis). Z is stored in mm_dtype
    # (bf16 by default) to halve the repeated Z_j streaming in the decode stage.
    z = pl.pallas_call(
        _spmm_kernel,
        out_shape=jax.ShapeDtypeStruct((n_pad, h2_pad), mm_dtype),
        grid=(n_pad // tm, n_pad // tk_n),
        in_specs=[pl.BlockSpec((tm, tk_n), lambda i, k: (i, k)),
                  pl.BlockSpec((tk_n, h2_pad), lambda i, k: (k, 0))],
        out_specs=pl.BlockSpec((tm, h2_pad), lambda i, k: (i, 0)),
        scratch_shapes=[pltpu.VMEM((tm, h2_pad), jnp.float32)],
        compiler_params=cp_acc,
    )(adjp, hw2)

    # Stage 4: A_pred = sigmoid(Z @ Z^T), tiled over (row, col) output blocks with
    # large lane-dense output tiles (the N^2 write is the dominant HBM cost).
    # TODO(synk): if the consumer accepts a symmetric-packed result, restrict the
    # grid to i<=j tiles to halve compute and the output write.
    a_pred = pl.pallas_call(
        _decode_kernel,
        out_shape=jax.ShapeDtypeStruct((n_pad, n_pad), out_dtype),
        grid=(n_pad // dec_i, n_pad // dec_j),
        in_specs=[pl.BlockSpec((dec_i, h2_pad), lambda i, j: (i, 0)),
                  pl.BlockSpec((dec_j, h2_pad), lambda i, j: (j, 0))],
        out_specs=pl.BlockSpec((dec_i, dec_j), lambda i, j: (i, j)),
        compiler_params=cp_dec,
    )(z, z)
    return a_pred


# ---------------------------------------------------------------------------
# Public wrapper.
# ---------------------------------------------------------------------------
def gae_forward(x, adj, w1, w2, *, matmul_dtype=jnp.bfloat16,
                out_dtype=jnp.float32, force_tiled=False):
    """A_pred = sigmoid( Z @ Z.T ) where Z = adj @ (relu(adj @ (X@W1)) @ W2).

    matmul_dtype: dtype of MXU operands / streamed intermediates (bf16 default;
                  accumulation, ReLU and sigmoid always run in float32).
    out_dtype:    dtype of the dense A_pred output (f32 keeps module semantics;
                  bf16 halves the N^2 output write).
    """
    n, f = x.shape
    h1 = w1.shape[1]
    h2 = w2.shape[1]

    n_pad = _round_up(n, 128)
    f_pad = _round_up(f, 128)
    h1_pad = _round_up(h1, 128)
    h2_pad = _round_up(h2, 128)

    mm_dtype = jnp.dtype(matmul_dtype)
    out_dtype = jnp.dtype(out_dtype)
    vmem_limit = _vmem_limit_bytes()
    tiles = _select_tiles(vmem_limit)

    # Lane-dense, zero-padded operands (only materialized when not already aligned).
    xp = _pad2(x, (n_pad, f_pad), mm_dtype)
    adjp = _pad2(adj, (n_pad, n_pad), mm_dtype)
    w1p = _pad2(w1, (f_pad, h1_pad), mm_dtype)
    w2p = _pad2(w2, (h1_pad, h2_pad), mm_dtype)

    # Fused-path footprint estimate (no grid -> nothing is double-buffered).
    item = mm_dtype.itemsize
    fused_vmem = (
        item * (n_pad * f_pad + n_pad * n_pad + f_pad * h1_pad + h1_pad * h2_pad)
        + out_dtype.itemsize * n_pad * n_pad
        + 4 * (2 * n_pad * h1_pad + 2 * n_pad * h2_pad + n_pad * n_pad)
    )
    # Small problems stay fully fused (launch-overhead bound); anything bigger goes
    # to the K-tiled multi-kernel path (parallel grid axes -> both v7x TensorCores).
    use_fused = (not force_tiled) and (n_pad <= 1024) and \
                (fused_vmem * 5 // 4 <= vmem_limit)

    if use_fused:
        a_pred = _gae_fused(xp, adjp, w1p, w2p, vmem_limit=vmem_limit,
                            out_dtype=out_dtype)
    else:
        a_pred = _gae_tiled(xp, adjp, w1p, w2p, tiles=tiles,
                            vmem_limit=vmem_limit, mm_dtype=mm_dtype,
                            out_dtype=out_dtype)
    return a_pred[:n, :n]


# ---------------------------------------------------------------------------
# Host-side helpers / reference.
# ---------------------------------------------------------------------------
def glorot_init(key, input_dim, output_dim):
    init_range = np.sqrt(6.0 / (input_dim + output_dim))
    return jax.random.uniform(key, (input_dim, output_dim), dtype=jnp.float32,
                              minval=-init_range, maxval=init_range)


def gae_reference(x, adj, w1, w2):
    h = jnp.maximum(adj @ (x @ w1), 0.0)
    z = adj @ (h @ w2)
    return jax.nn.sigmoid(z @ z.T)


if __name__ == "__main__":
    # Small shapes consistent with the module:
    #   N nodes, input feature dim == N (input_dim = adj.shape[0]),
    #   hidden1_dim = 32, hidden2_dim = 16.
    N, H1, H2 = 16, 32, 16

    key = jax.random.PRNGKey(0)
    kx, kadj, kw1, kw2 = jax.random.split(key, 4)

    x = jax.random.normal(kx, (N, N), dtype=jnp.float32)

    # Symmetric normalized dense adjacency (synthetic).
    a = (jax.random.uniform(kadj, (N, N)) > 0.7).astype(jnp.float32)
    a = jnp.maximum(a, a.T) + jnp.eye(N, dtype=jnp.float32)
    deg = jnp.sum(a, axis=1, keepdims=True)
    adj = a / jnp.sqrt(deg) / jnp.sqrt(deg.T)

    w1 = glorot_init(kw1, N, H1)
    w2 = glorot_init(kw2, H1, H2)

    ref = gae_reference(x, adj, w1, w2)

    # 1) Fused single-kernel path, f32 operands -> tight check.
    out_fused_f32 = jax.block_until_ready(
        gae_forward(x, adj, w1, w2, matmul_dtype=jnp.float32))
    np.testing.assert_allclose(np.asarray(out_fused_f32), np.asarray(ref),
                               rtol=1e-5, atol=1e-5)

    # 2) Tiled K-tiled multi-kernel path, f32 operands -> tight check.
    out_tiled_f32 = jax.block_until_ready(
        gae_forward(x, adj, w1, w2, matmul_dtype=jnp.float32, force_tiled=True))
    np.testing.assert_allclose(np.asarray(out_tiled_f32), np.asarray(ref),
                               rtol=1e-5, atol=1e-5)

    # 3) Default bf16 MXU-operand path (fused at this size) -> loose check.
    out_bf16 = jax.block_until_ready(gae_forward(x, adj, w1, w2))
    np.testing.assert_allclose(np.asarray(out_bf16), np.asarray(ref),
                               rtol=0.0, atol=5e-2)

    # 4) Tiled bf16 path (what large N uses automatically) -> loose check.
    out_tiled_bf16 = jax.block_until_ready(
        gae_forward(x, adj, w1, w2, force_tiled=True))
    np.testing.assert_allclose(np.asarray(out_tiled_bf16), np.asarray(ref),
                               rtol=0.0, atol=5e-2)

    print("KERNEL_OK")
</pallas_src>

<mosaic_0001>
module attributes {stable_mosaic.version = 11 : i64} {
  func.func @_gae_fused_kernel(%arg0: memref<128x128xf32, #tpu.memory_space<vmem>>, %arg1: memref<128x128xf32, #tpu.memory_space<vmem>>, %arg2: memref<128x128xf32, #tpu.memory_space<vmem>>, %arg3: memref<128x128xf32, #tpu.memory_space<vmem>>, %arg4: memref<128x128xf32, #tpu.memory_space<vmem>>) attributes {dimension_semantics = [], scalar_prefetch = 0 : i64, scratch_operands = 0 : i64, tpu.core_type = #tpu.core_type<tc>} {
    %c0 = arith.constant 0 : index
    %c0_0 = arith.constant 0 : index
    %0 = vector.load %arg0[%c0, %c0_0] : memref<128x128xf32, #tpu.memory_space<vmem>>, vector<128x128xf32>
    %c0_1 = arith.constant 0 : index
    %c0_2 = arith.constant 0 : index
    %1 = vector.load %arg1[%c0_1, %c0_2] : memref<128x128xf32, #tpu.memory_space<vmem>>, vector<128x128xf32>
    %c0_3 = arith.constant 0 : index
    %c0_4 = arith.constant 0 : index
    %2 = vector.load %arg2[%c0_3, %c0_4] : memref<128x128xf32, #tpu.memory_space<vmem>>, vector<128x128xf32>
    %cst = arith.constant dense<0.000000e+00> : vector<128x128xf32>
    %3 = tpu.matmul %0, %2, %cst {dimension_numbers = #tpu.dot_dimension_numbers<[1], [0], [0], [1], [0, 0, 1, 1], [], []>} : vector<128x128xf32>, vector<128x128xf32>, vector<128x128xf32> -> vector<128x128xf32>
    %cst_5 = arith.constant dense<0.000000e+00> : vector<128x128xf32>
    %4 = tpu.matmul %1, %3, %cst_5 {dimension_numbers = #tpu.dot_dimension_numbers<[1], [0], [0], [1], [0, 0, 1, 1], [], []>} : vector<128x128xf32>, vector<128x128xf32>, vector<128x128xf32> -> vector<128x128xf32>
    %cst_6 = arith.constant 0.000000e+00 : f32
    %5 = vector.broadcast %cst_6 : f32 to vector<128x128xf32>
    %6 = arith.maximumf %4, %5 : vector<128x128xf32>
    %c0_7 = arith.constant 0 : index
    %c0_8 = arith.constant 0 : index
    %7 = vector.load %arg3[%c0_7, %c0_8] : memref<128x128xf32, #tpu.memory_space<vmem>>, vector<128x128xf32>
    %cst_9 = arith.constant dense<0.000000e+00> : vector<128x128xf32>
    %8 = tpu.matmul %6, %7, %cst_9 {dimension_numbers = #tpu.dot_dimension_numbers<[1], [0], [0], [1], [0, 0, 1, 1], [], []>} : vector<128x128xf32>, vector<128x128xf32>, vector<128x128xf32> -> vector<128x128xf32>
    %cst_10 = arith.constant dense<0.000000e+00> : vector<128x128xf32>
    %9 = tpu.matmul %1, %8, %cst_10 {dimension_numbers = #tpu.dot_dimension_numbers<[1], [0], [0], [1], [0, 0, 1, 1], [], []>} : vector<128x128xf32>, vector<128x128xf32>, vector<128x128xf32> -> vector<128x128xf32>
    %cst_11 = arith.constant dense<0.000000e+00> : vector<128x128xf32>
    %10 = tpu.matmul %9, %9, %cst_11 {dimension_numbers = #tpu.dot_dimension_numbers<[1], [1], [0], [0], [0, 0, 1, 0], [], []>} : vector<128x128xf32>, vector<128x128xf32>, vector<128x128xf32> -> vector<128x128xf32>
    %11 = arith.negf %10 : vector<128x128xf32>
    %12 = math.exp %11 : vector<128x128xf32>
    %cst_12 = arith.constant 1.000000e+00 : f32
    %13 = vector.broadcast %cst_12 : f32 to vector<128x128xf32>
    %14 = arith.addf %13, %12 : vector<128x128xf32>
    %15 = arith.divf %13, %14 : vector<128x128xf32>
    %c0_13 = arith.constant 0 : index
    %c0_14 = arith.constant 0 : index
    %16 = vector.load %arg4[%c0_13, %c0_14] : memref<128x128xf32, #tpu.memory_space<vmem>>, vector<128x128xf32>
    tpu.vector_store %arg4[%c0_13, %c0_14], %15 {strides = array<i32>} : memref<128x128xf32, #tpu.memory_space<vmem>>, vector<128x128xf32>,
    return
  }
}

</mosaic_0001>

<bundles_post_ra>
// kernel: tpu_custom_call.1
= control target key start
LH: loop header
LB: loop body
LE: loop exit
PB: predicated region body
PF: predicated region fallthrough
CT: control target
= control target key end

     0   :  { %9 = vsyncpa [#allocation3], 0  ;;  %s1770_s0 = inlined_call_operand.hbm [shape: f32[128,128], index: 0, kind: input, shape index: {}]   ;;  %s1771_s1 = inlined_call_operand.hbm [shape: f32[128,128], index: 1, kind: input, shape index: {}]   ;;  %s1772_s2 = inlined_call_operand.hbm [shape: f32[128,128], index: 2, kind: input, shape index: {}]   ;;  %s1773_s3 = inlined_call_operand.hbm [shape: f32[128,128], index: 3, kind: input, shape index: {}]   ;;  %s1774_s4 = inlined_call_operand.hbm [shape: f32[128,128], index: 4, kind: output, shape index: {}]  }
   0x1   :  { %10 = vsyncpa [#allocation6], 0 }
   0x2   :  { %11 = vsyncpa [#allocation9], 0 }
   0x3   :  { %12 = vsyncpa [#allocation4], 0  ;;  %s1644_s15 = smov [#allocation5]   ;;  %s1645_s17 = smov [#allocation2]  }
   0x4   :  { %s30_s16 = sshll.u32 %s1644_s15, 4  ;;  %s18_s18 = sshll.u32 %s1645_s17, 4  ;;  %s31_s16 = int_to_ptr.vmem [resolvable:$true] %s30_s16  ;;  %s19_s18 = int_to_ptr.vmem [resolvable:$true] %s18_s18 }
   0x5   :  { %s1544_s19 = scalar_lea.vmem %s31_s16, 2048  ;;  %p1549_p1 = scmp.lt.s32.totalorder %s31_s16, %s31_s16 }
   0x6   :  { %p1545_p0 = scmp.ne.s32.totalorder %s31_s16, %s1544_s19  ;;  %p1550_p2 = scmp.lt.s32.totalorder %s1544_s19, %s1544_s19 }
   0x8   :  { %p1551_p3 = por %p1550_p2, %p1549_p1 }
   0xa   :  { %p1552_p4 = pnand %p1551_p3, %p1545_p0 }
   0xc   :  { %1555 = shalt.err (!%p1552_p4)
}
   0xd   :  { %s1646_s20 = smov 128   ;;  %s1647_s21 = smov 8  }
   0xe   :  { %36 = dma.hbm_to_vmem [thread:$0]  %s1771_s1, 2048, %s31_s16, [#allocation6], %s1646_s20, %s1646_s20, %s1647_s21  }
   0xf   :  { %s1564_s24 = scalar_lea.vmem %s19_s18, 2048  ;;  %p1569_p6 = scmp.lt.s32.totalorder %s19_s18, %s19_s18 }
  0x10   :  { %p1565_p5 = scmp.ne.s32.totalorder %s19_s18, %s1564_s24  ;;  %p1570_p7 = scmp.lt.s32.totalorder %s1564_s24, %s1564_s24 }
  0x12   :  { %p1571_p8 = por %p1570_p7, %p1569_p6 }
  0x14   :  { %p1572_p9 = pnand %p1571_p8, %p1565_p5 }
  0x16   :  { %1575 = shalt.err (!%p1572_p9)
}
  0x17   :  { %24 = dma.hbm_to_vmem [thread:$0]  %s1770_s0, 2048, %s19_s18, [#allocation3], %s1646_s20, %s1646_s20, %s1647_s21  }
  0x18   :  { %s1648_s27 = smov [#allocation7]   ;;  %s1649_s29 = smov [#allocation8]  }
  0x19   :  { %s42_s28 = sshll.u32 %s1648_s27, 4  ;;  %s54_s30 = sshll.u32 %s1649_s29, 4  ;;  %s43_s28 = int_to_ptr.vmem [resolvable:$true] %s42_s28  ;;  %s55_s30 = int_to_ptr.vmem [resolvable:$true] %s54_s30 }
  0x1a   :  { %s1584_s1 = scalar_lea.vmem %s43_s28, 2048  ;;  %p1589_p11 = scmp.lt.s32.totalorder %s43_s28, %s43_s28 }
  0x1b   :  { %p1585_p10 = scmp.ne.s32.totalorder %s43_s28, %s1584_s1  ;;  %p1590_p12 = scmp.lt.s32.totalorder %s1584_s1, %s1584_s1 }
  0x1d   :  { %p1591_p13 = por %p1590_p12, %p1589_p11 }
  0x1f   :  { %p1592_p0 = pnand %p1591_p13, %p1585_p10 }
  0x21   :  { %1595 = shalt.err (!%p1592_p0)
}
  0x22   :  { %48 = dma.hbm_to_vmem [thread:$0]  %s1772_s2, 2048, %s43_s28, [#allocation6], %s1646_s20, %s1646_s20, %s1647_s21  }
  0x23   :  { %s1604_s0 = scalar_lea.vmem %s55_s30, 2048  ;;  %p1609_p2 = scmp.lt.s32.totalorder %s55_s30, %s55_s30 }
  0x24   :  { %p1605_p1 = scmp.ne.s32.totalorder %s55_s30, %s1604_s0  ;;  %p1610_p3 = scmp.lt.s32.totalorder %s1604_s0, %s1604_s0 }
  0x26   :  { %p1611_p4 = por %p1610_p3, %p1609_p2 }
  0x28   :  { %p1612_p5 = pnand %p1611_p4, %p1605_p1 }
  0x2a   :  { %1615 = shalt.err (!%p1612_p5)
}
  0x2b   :  { %60 = dma.hbm_to_vmem [thread:$0]  %s1773_s3, 2048, %s55_s30, [#allocation9], %s1646_s20, %s1646_s20, %s1647_s21  }
  0x2c   :  { %1636 = dma.done.wait [#allocation3], 2048  }
  0x2d   :  { %1637 = vsyncadd [#allocation3], 4294965248 }
  0x2e   :  { %1638 = dma.done.wait [#allocation6], 4096  }
  0x2f   :  { %1639 = vsyncadd [#allocation6], 4294963200 }
  0x30   :  { %1640 = dma.done.wait [#allocation9], 2048  }
  0x31   :  { %1641 = vsyncadd [#allocation9], 4294965248  ;;  %v120_v0 = vld [vmem:[#allocation7 + $0x78] sm:$0xff]  ;;  %v119_v1 = vld [vmem:[#allocation7 + $0x70] sm:$0xff]  ;;  %s1650_s2 = smov [#allocation10]  }
  0x32   :  { %1185 = vmatprep.subr.mxu1 %v120_v0  ;;  %v118_v2 = vld [vmem:[#allocation7 + $0x68] sm:$0xff]  ;;  %v117_v3 = vld [vmem:[#allocation7 + $0x60] sm:$0xff]  ;;  %v116_v5 = vld [vmem:[#allocation7 + $0x58] sm:$0xff]  ;;  %s995_s3 = sshll.u32 %s1650_s2, 4  ;;  %s996_s3 = int_to_ptr.vmem [resolvable:$true] %s995_s3 }
  0x33   :  { %1186 = vmatpush3.msra.mxu1 %v120_v0  ;;  %v73_v4 = vld [vmem:[#allocation2] sm:$0xff]  ;;  %v115_v6 = vld [vmem:[#allocation7 + $0x50] sm:$0xff]  ;;  %v114_v7 = vld [vmem:[#allocation7 + $0x48] sm:$0xff]  ;;  %s1616_s9 = scalar_lea.vmem %s996_s3, 2048  ;;  %p1621_p7 = scmp.lt.s32.totalorder %s996_s3, %s996_s3 }
  0x34   :  { %1187 = vmatprep.subr.mxu1 %v119_v1  ;;  %1217 = vmatprep.mubr.f32.mxu1 %v73_v4  ;;  %v113_v8 = vld [vmem:[#allocation7 + $0x40] sm:$0xff]  ;;  %v112_v9 = vld [vmem:[#allocation7 + $0x38] sm:$0xff]  ;;  %v111_v10 = vld [vmem:[#allocation7 + $0x30] sm:$0xff]  ;;  %p1617_p6 = scmp.ne.s32.totalorder %s996_s3, %s1616_s9  ;;  %p1622_p8 = scmp.lt.s32.totalorder %s1616_s9, %s1616_s9 }
  0x35   :  { %1188 = vmatpush3.msra.mxu1 %v119_v1  ;;  %v110_v11 = vld [vmem:[#allocation7 + $0x28] sm:$0xff]  ;;  %v109_v12 = vld [vmem:[#allocation7 + $0x20] sm:$0xff]  ;;  %v108_v13 = vld [vmem:[#allocation7 + $0x18] sm:$0xff] }
  0x36   :  { %1189 = vmatprep.subr.mxu1 %v118_v2  ;;  %v107_v14 = vld [vmem:[#allocation7 + $0x10] sm:$0xff]  ;;  %v106_v15 = vld [vmem:[#allocation7 + $0x8] sm:$0xff]  ;;  %v105_v16 = vld [vmem:[#allocation7] sm:$0xff]  ;;  %p1623_p9 = por %p1622_p8, %p1621_p7 }
  0x37   :  { %1190 = vmatpush3.msra.mxu1 %v118_v2  ;;  %v74_v17 = vld [vmem:[#allocation2 + $0x8] sm:$0xff]  ;;  %v75_v18 = vld [vmem:[#allocation2 + $0x10] sm:$0xff]  ;;  %v76_v19 = vld [vmem:[#allocation2 + $0x18] sm:$0xff] }
  0x38   :  { %1191 = vmatprep.subr.mxu1 %v117_v3  ;;  %v77_v20 = vld [vmem:[#allocation2 + $0x20] sm:$0xff]  ;;  %v78_v21 = vld [vmem:[#allocation2 + $0x28] sm:$0xff]  ;;  %v79_v22 = vld [vmem:[#allocation2 + $0x30] sm:$0xff]  ;;  %p1624_p10 = pnand %p1623_p9, %p1617_p6 }
  0x39   :  { %1192 = vmatpush3.msra.mxu1 %v117_v3  ;;  %v80_v23 = vld [vmem:[#allocation2 + $0x38] sm:$0xff]  ;;  %v81_v24 = vld [vmem:[#allocation2 + $0x40] sm:$0xff]  ;;  %v82_v25 = vld [vmem:[#allocation2 + $0x48] sm:$0xff] }
  0x3a   :  { %1193 = vmatprep.subr.mxu1 %v116_v5  ;;  %v83_v26 = vld [vmem:[#allocation2 + $0x50] sm:$0xff]  ;;  %v84_v27 = vld [vmem:[#allocation2 + $0x58] sm:$0xff]  ;;  %v85_v28 = vld [vmem:[#allocation2 + $0x60] sm:$0xff] }
  0x3b   :  { %1194 = vmatpush3.msra.mxu1 %v116_v5  ;;  %v86_v29 = vld [vmem:[#allocation2 + $0x68] sm:$0xff]  ;;  %v87_v30 = vld [vmem:[#allocation2 + $0x70] sm:$0xff]  ;;  %v88_v31 = vld [vmem:[#allocation2 + $0x78] sm:$0xff] }
  0x3c   :  { %1195 = vmatprep.subr.mxu1 %v115_v6  ;;  %v1700_v32 = vld [vmem:[#allocation5] sm:$0xff]  ;;  %v442_v33 = vld [vmem:[#allocation8 + $0x78] sm:$0xff]  ;;  %v441_v34 = vld [vmem:[#allocation8 + $0x70] sm:$0xff] }
  0x3d   :  { %1196 = vmatpush3.msra.mxu1 %v115_v6  ;;  %1297 = vmatprep.subr.mxu0 %v442_v33  ;;  %v440_v35 = vld [vmem:[#allocation8 + $0x68] sm:$0xff]  ;;  %v439_v36 = vld [vmem:[#allocation8 + $0x60] sm:$0xff]  ;;  %v438_v37 = vld [vmem:[#allocation8 + $0x58] sm:$0xff] }
  0x3e   :  { %1197 = vmatprep.subr.mxu1 %v114_v7  ;;  %1298 = vmatpush3.msra.mxu0 %v442_v33  ;;  %v437_v38 = vld [vmem:[#allocation8 + $0x50] sm:$0xff]  ;;  %v436_v39 = vld [vmem:[#allocation8 + $0x48] sm:$0xff]  ;;  %v435_v40 = vld [vmem:[#allocation8 + $0x40] sm:$0xff] }
  0x3f   :  { %1198 = vmatpush3.msra.mxu1 %v114_v7  ;;  %1299 = vmatprep.subr.mxu0 %v441_v34  ;;  %v434_v41 = vld [vmem:[#allocation8 + $0x38] sm:$0xff]  ;;  %v433_v42 = vld [vmem:[#allocation8 + $0x30] sm:$0xff]  ;;  %v432_v43 = vld [vmem:[#allocation8 + $0x28] sm:$0xff] }
  0x40   :  { %1199 = vmatprep.subr.mxu1 %v113_v8  ;;  %1300 = vmatpush3.msra.mxu0 %v441_v34  ;;  %v431_v44 = vld [vmem:[#allocation8 + $0x20] sm:$0xff]  ;;  %v430_v45 = vld [vmem:[#allocation8 + $0x18] sm:$0xff]  ;;  %v1703_v62 = vld [vmem:[#allocation5 + $0x8] sm:$0xff] }
  0x41   :  { %1200 = vmatpush3.msra.mxu1 %v113_v8  ;;  %1301 = vmatprep.subr.mxu0 %v440_v35  ;;  %v1705_v63 = vld [vmem:[#allocation5 + $0x10] sm:$0xff]  ;;  %v1709_v0 = vld [vmem:[#allocation5 + $0x18] sm:$0xff]  ;;  %v1711_v1 = vld [vmem:[#allocation5 + $0x20] sm:$0xff] }
  0x42   :  { %1201 = vmatprep.subr.mxu1 %v112_v9  ;;  %1302 = vmatpush3.msra.mxu0 %v440_v35  ;;  %v1715_v2 = vld [vmem:[#allocation5 + $0x28] sm:$0xff]  ;;  %v1717_v3 = vld [vmem:[#allocation5 + $0x30] sm:$0xff]  ;;  %v1721_v4 = vld [vmem:[#allocation5 + $0x38] sm:$0xff] }
  0x43   :  { %1202 = vmatpush3.msra.mxu1 %v112_v9  ;;  %1303 = vmatprep.subr.mxu0 %v439_v36  ;;  %v1723_v5 = vld [vmem:[#allocation5 + $0x40] sm:$0xff]  ;;  %v1727_v6 = vld [vmem:[#allocation5 + $0x48] sm:$0xff]  ;;  %v1729_v7 = vld [vmem:[#allocation5 + $0x50] sm:$0xff] }
  0x44   :  { %1203 = vmatprep.subr.mxu1 %v111_v10  ;;  %1304 = vmatpush3.msra.mxu0 %v439_v36  ;;  %v1733_v8 = vld [vmem:[#allocation5 + $0x58] sm:$0xff]  ;;  %v1735_v9 = vld [vmem:[#allocation5 + $0x60] sm:$0xff] }
  0x45   :  { %1204 = vmatpush3.msra.mxu1 %v111_v10  ;;  %1305 = vmatprep.subr.mxu0 %v438_v37  ;;  %v1739_v10 = vld [vmem:[#allocation5 + $0x68] sm:$0xff] }
  0x46   :  { %1205 = vmatprep.subr.mxu1 %v110_v11  ;;  %1306 = vmatpush3.msra.mxu0 %v438_v37 }
  0x47   :  { %1206 = vmatpush3.msra.mxu1 %v110_v11  ;;  %1307 = vmatprep.subr.mxu0 %v437_v38  ;;  %v1741_v11 = vld [vmem:[#allocation5 + $0x70] sm:$0xff] }
  0x48   :  { %1207 = vmatprep.subr.mxu1 %v109_v12  ;;  %1308 = vmatpush3.msra.mxu0 %v437_v38 }
  0x49   :  { %1208 = vmatpush3.msra.mxu1 %v109_v12  ;;  %1309 = vmatprep.subr.mxu0 %v436_v39  ;;  %v1745_v12 = vld [vmem:[#allocation5 + $0x78] sm:$0xff] }
  0x4a   :  { %1209 = vmatprep.subr.mxu1 %v108_v13  ;;  %1310 = vmatpush3.msra.mxu0 %v436_v39 }
  0x4b   :  { %1210 = vmatpush3.msra.mxu1 %v108_v13  ;;  %1311 = vmatprep.subr.mxu0 %v435_v40  ;;  %v429_v13 = vld [vmem:[#allocation8 + $0x10] sm:$0xff] }
  0x4c   :  { %1211 = vmatprep.subr.mxu1 %v107_v14  ;;  %1312 = vmatpush3.msra.mxu0 %v435_v40 }
  0x4d   :  { %1212 = vmatpush3.msra.mxu1 %v107_v14  ;;  %1313 = vmatprep.subr.mxu0 %v434_v41  ;;  %v428_v14 = vld [vmem:[#allocation8 + $0x8] sm:$0xff] }
  0x4e   :  { %1213 = vmatprep.subr.mxu1 %v106_v15  ;;  %1314 = vmatpush3.msra.mxu0 %v434_v41 }
  0x4f   :  { %1214 = vmatpush3.msra.mxu1 %v106_v15  ;;  %1315 = vmatprep.subr.mxu0 %v433_v42  ;;  %v427_v15 = vld [vmem:[#allocation8] sm:$0xff] }
  0x50   :  { %1215 = vmatprep.subr.mxu1 %v105_v16  ;;  %1316 = vmatpush3.msra.mxu0 %v433_v42 }
  0x51   :  { %1216 = vmatpush3.msra.mxu1 %v105_v16  ;;  %1317 = vmatprep.subr.mxu0 %v432_v43 }
  0x52   :  { %1218 = vmatmul.mubr.f32.vlgmr.msra.gmra.mxu1 %v74_v17  ;;  %1318 = vmatpush3.msra.mxu0 %v432_v43 }
  0x53   :  { %1220 = vmatprep.mubr.f32.mxu1 %v75_v18  ;;  %1319 = vmatprep.subr.mxu0 %v431_v44 }
  0x54   :  { %1320 = vmatpush3.msra.mxu0 %v431_v44 }
  0x55   :  { %1321 = vmatprep.subr.mxu0 %v430_v45 }
  0x56   :  { %1221 = vmatmul.mubr.f32.gmra.mxu1 %v76_v19  ;;  %1322 = vmatpush3.msra.mxu0 %v430_v45 }
  0x57   :  { %1223 = vmatprep.mubr.f32.mxu1 %v77_v20  ;;  %1323 = vmatprep.subr.mxu0 %v429_v13 }
  0x58   :  { %1324 = vmatpush3.msra.mxu0 %v429_v13 }
  0x59   :  { %1325 = vmatprep.subr.mxu0 %v428_v14 }
  0x5a   :  { %1224 = vmatmul.mubr.f32.gmra.mxu1 %v78_v21  ;;  %1326 = vmatpush3.msra.mxu0 %v428_v14 }
  0x5b   :  { %1226 = vmatprep.mubr.f32.mxu1 %v79_v22  ;;  %1327 = vmatprep.subr.mxu0 %v427_v15 }
  0x5c   :  { %1328 = vmatpush3.msra.mxu0 %v427_v15 }
  0x5e   :  { %1227 = vmatmul.mubr.f32.gmra.mxu1 %v80_v23 }
  0x5f   :  { %1229 = vmatprep.mubr.f32.mxu1 %v81_v24 }
  0x62   :  { %1230 = vmatmul.mubr.f32.gmra.mxu1 %v82_v25 }
  0x63   :  { %1232 = vmatprep.mubr.f32.mxu1 %v83_v26 }
  0x66   :  { %1233 = vmatmul.mubr.f32.gmra.mxu1 %v84_v27 }
  0x67   :  { %1235 = vmatprep.mubr.f32.mxu1 %v85_v28 }
  0x6a   :  { %1236 = vmatmul.mubr.f32.gmra.mxu1 %v86_v29 }
  0x6b   :  { %1238 = vmatprep.mubr.f32.mxu1 %v87_v30 }
  0x6e   :  { %1239 = vmatmul.mubr.f32.gmra.mxu1 %v88_v31 }
  0x6f   :  { %1273 = vmatprep.mubr.f32.mxu1 %v1700_v32 }
 0x112   :  { %v1219_v46 = vpop.f32.mrf.mxu1 }
 0x114   :  { %v187_v47 = vpop.f32.mrf.mxu1 }
 0x116   :  { %v1222_v48 = vpop.f32.mrf.mxu1 }
 0x118   :  { %v197_v49 = vpop.f32.mrf.mxu1 }
 0x11a   :  { %v1225_v50 = vpop.f32.mrf.mxu1 }
 0x11c   :  { %v207_v51 = vpop.f32.mrf.mxu1 }
 0x11e   :  { %v1228_v52 = vpop.f32.mrf.mxu1 }
 0x120   :  { %v217_v53 = vpop.f32.mrf.mxu1 }
 0x122   :  { %v1231_v54 = vpop.f32.mrf.mxu1 }
 0x124   :  { %v227_v55 = vpop.f32.mrf.mxu1 }
 0x126   :  { %v1234_v56 = vpop.f32.mrf.mxu1 }
 0x128   :  { %v237_v57 = vpop.f32.mrf.mxu1 }
 0x12a   :  { %v1237_v58 = vpop.f32.mrf.mxu1 }
 0x12c   :  { %v247_v59 = vpop.f32.mrf.mxu1 }
 0x12e   :  { %v1240_v60 = vpop.f32.mrf.mxu1 }
 0x12f   :  { %1241 = vmatprep.subr.mxu1 %v1240_v60 }
 0x130   :  { %v257_v61 = vpop.f32.mrf.mxu1  ;;  %1242 = vmatpush3.msra.mxu1 %v1240_v60 }
 0x131   :  { %1243 = vmatprep.subr.mxu1 %v257_v61 }
 0x132   :  { %1244 = vmatpush3.msra.mxu1 %v257_v61 }
 0x133   :  { %1245 = vmatprep.subr.mxu1 %v1237_v58 }
 0x134   :  { %1246 = vmatpush3.msra.mxu1 %v1237_v58 }
 0x135   :  { %1247 = vmatprep.subr.mxu1 %v247_v59 }
 0x136   :  { %1248 = vmatpush3.msra.mxu1 %v247_v59 }
 0x137   :  { %1249 = vmatprep.subr.mxu1 %v1234_v56 }
 0x138   :  { %1250 = vmatpush3.msra.mxu1 %v1234_v56 }
 0x139   :  { %1251 = vmatprep.subr.mxu1 %v237_v57 }
 0x13a   :  { %1252 = vmatpush3.msra.mxu1 %v237_v57 }
 0x13b   :  { %1253 = vmatprep.subr.mxu1 %v1231_v54 }
 0x13c   :  { %1254 = vmatpush3.msra.mxu1 %v1231_v54 }
 0x13d   :  { %1255 = vmatprep.subr.mxu1 %v227_v55 }
 0x13e   :  { %1256 = vmatpush3.msra.mxu1 %v227_v55 }
 0x13f   :  { %1257 = vmatprep.subr.mxu1 %v1228_v52 }
 0x140   :  { %1258 = vmatpush3.msra.mxu1 %v1228_v52 }
 0x141   :  { %1259 = vmatprep.subr.mxu1 %v217_v53 }
 0x142   :  { %1260 = vmatpush3.msra.mxu1 %v217_v53 }
 0x143   :  { %1261 = vmatprep.subr.mxu1 %v1225_v50 }
 0x144   :  { %1262 = vmatpush3.msra.mxu1 %v1225_v50 }
 0x145   :  { %1263 = vmatprep.subr.mxu1 %v207_v51 }
 0x146   :  { %1264 = vmatpush3.msra.mxu1 %v207_v51 }
 0x147   :  { %1265 = vmatprep.subr.mxu1 %v1222_v48 }
 0x148   :  { %1266 = vmatpush3.msra.mxu1 %v1222_v48 }
 0x149   :  { %1267 = vmatprep.subr.mxu1 %v197_v49 }
 0x14a   :  { %1268 = vmatpush3.msra.mxu1 %v197_v49 }
 0x14b   :  { %1269 = vmatprep.subr.mxu1 %v1219_v46 }
 0x14c   :  { %1270 = vmatpush3.msra.mxu1 %v1219_v46 }
 0x14d   :  { %1271 = vmatprep.subr.mxu1 %v187_v47 }
 0x14e   :  { %1272 = vmatpush3.msra.mxu1 %v187_v47 }
 0x14f   :  { %1274 = vmatmul.mubr.f32.vlgmr.msra.gmra.mxu1 %v1703_v62 }
 0x150   :  { %1276 = vmatprep.mubr.f32.mxu1 %v1705_v63 }
 0x153   :  { %1277 = vmatmul.mubr.f32.gmra.mxu1 %v1709_v0 }
 0x154   :  { %1279 = vmatprep.mubr.f32.mxu1 %v1711_v1 }
 0x157   :  { %1280 = vmatmul.mubr.f32.gmra.mxu1 %v1715_v2 }
 0x158   :  { %1282 = vmatprep.mubr.f32.mxu1 %v1717_v3 }
 0x15b   :  { %1283 = vmatmul.mubr.f32.gmra.mxu1 %v1721_v4 }
 0x15c   :  { %1285 = vmatprep.mubr.f32.mxu1 %v1723_v5 }
 0x15f   :  { %1286 = vmatmul.mubr.f32.gmra.mxu1 %v1727_v6 }
 0x160   :  { %1288 = vmatprep.mubr.f32.mxu1 %v1729_v7 }
 0x163   :  { %1289 = vmatmul.mubr.f32.gmra.mxu1 %v1733_v8 }
 0x164   :  { %1291 = vmatprep.mubr.f32.mxu1 %v1735_v9 }
 0x167   :  { %1292 = vmatmul.mubr.f32.gmra.mxu1 %v1739_v10 }
 0x168   :  { %1294 = vmatprep.mubr.f32.mxu1 %v1741_v11 }
 0x16b   :  { %1295 = vmatmul.mubr.f32.gmra.mxu1 %v1745_v12 }
 0x16c   :  { %1385 = vmatprep.mubr.f32.mxu1 %v1700_v32 }
 0x20f   :  { %v1275_v16 = vpop.f32.mrf.mxu1 }
 0x210   :  { %v412_v19 = vmax.f32 %v1275_v16, 0.0 }
 0x211   :  { %v332_v17 = vpop.f32.mrf.mxu1 }
 0x212   :  { %v411_v18 = vmax.f32 %v332_v17, 0.0 }
 0x213   :  { %v1278_v20 = vpop.f32.mrf.mxu1 }
 0x214   :  { %1329 = vmatprep.mubr.f32.mxu0 %v411_v18  ;;  %v414_v23 = vmax.f32 %v1278_v20, 0.0 }
 0x215   :  { %v342_v21 = vpop.f32.mrf.mxu1  ;;  %1330 = vmatmul.mubr.f32.vlgmr.msra.gmra.mxu0 %v412_v19 }
 0x216   :  { %v413_v22 = vmax.f32 %v342_v21, 0.0 }
 0x217   :  { %v1281_v24 = vpop.f32.mrf.mxu1 }
 0x218   :  { %1332 = vmatprep.mubr.f32.mxu0 %v413_v22  ;;  %v416_v27 = vmax.f32 %v1281_v24, 0.0 }
 0x219   :  { %v352_v25 = vpop.f32.mrf.mxu1  ;;  %1333 = vmatmul.mubr.f32.gmra.mxu0 %v414_v23 }
 0x21a   :  { %v415_v26 = vmax.f32 %v352_v25, 0.0 }
 0x21b   :  { %v1284_v28 = vpop.f32.mrf.mxu1 }
 0x21c   :  { %1335 = vmatprep.mubr.f32.mxu0 %v415_v26  ;;  %v418_v31 = vmax.f32 %v1284_v28, 0.0 }
 0x21d   :  { %v362_v29 = vpop.f32.mrf.mxu1  ;;  %1336 = vmatmul.mubr.f32.gmra.mxu0 %v416_v27 }
 0x21e   :  { %v417_v30 = vmax.f32 %v362_v29, 0.0 }
 0x21f   :  { %v1287_v32 = vpop.f32.mrf.mxu1 }
 0x220   :  { %1338 = vmatprep.mubr.f32.mxu0 %v417_v30  ;;  %v420_v35 = vmax.f32 %v1287_v32, 0.0 }
 0x221   :  { %v372_v33 = vpop.f32.mrf.mxu1  ;;  %1339 = vmatmul.mubr.f32.gmra.mxu0 %v418_v31 }
 0x222   :  { %v419_v34 = vmax.f32 %v372_v33, 0.0 }
 0x223   :  { %v1290_v36 = vpop.f32.mrf.mxu1 }
 0x224   :  { %1341 = vmatprep.mubr.f32.mxu0 %v419_v34  ;;  %v422_v39 = vmax.f32 %v1290_v36, 0.0 }
 0x225   :  { %v382_v37 = vpop.f32.mrf.mxu1  ;;  %1342 = vmatmul.mubr.f32.gmra.mxu0 %v420_v35 }
 0x226   :  { %v421_v38 = vmax.f32 %v382_v37, 0.0 }
 0x227   :  { %v1293_v40 = vpop.f32.mrf.mxu1 }
 0x228   :  { %1344 = vmatprep.mubr.f32.mxu0 %v421_v38  ;;  %v424_v43 = vmax.f32 %v1293_v40, 0.0 }
 0x229   :  { %v392_v41 = vpop.f32.mrf.mxu1  ;;  %1345 = vmatmul.mubr.f32.gmra.mxu0 %v422_v39 }
 0x22a   :  { %v423_v42 = vmax.f32 %v392_v41, 0.0 }
 0x22b   :  { %v1296_v44 = vpop.f32.mrf.mxu1 }
 0x22c   :  { %1347 = vmatprep.mubr.f32.mxu0 %v423_v42  ;;  %v426_v47 = vmax.f32 %v1296_v44, 0.0 }
 0x22d   :  { %v402_v45 = vpop.f32.mrf.mxu1  ;;  %1348 = vmatmul.mubr.f32.gmra.mxu0 %v424_v43 }
 0x22e   :  { %v425_v46 = vmax.f32 %v402_v45, 0.0 }
 0x230   :  { %1350 = vmatprep.mubr.f32.mxu0 %v425_v46 }
 0x231   :  { %1351 = vmatmul.mubr.f32.gmra.mxu0 %v426_v47 }
 0x2d5   :  { %v1331_v48 = vpop.f32.mrf.mxu0 }
 0x2d7   :  { %v509_v49 = vpop.f32.mrf.mxu0 }
 0x2d9   :  { %v1334_v50 = vpop.f32.mrf.mxu0 }
 0x2db   :  { %v519_v51 = vpop.f32.mrf.mxu0 }
 0x2dd   :  { %v1337_v52 = vpop.f32.mrf.mxu0 }
 0x2df   :  { %v529_v53 = vpop.f32.mrf.mxu0 }
 0x2e1   :  { %v1340_v54 = vpop.f32.mrf.mxu0 }
 0x2e3   :  { %v539_v55 = vpop.f32.mrf.mxu0 }
 0x2e5   :  { %v1343_v56 = vpop.f32.mrf.mxu0 }
 0x2e7   :  { %v549_v57 = vpop.f32.mrf.mxu0 }
 0x2e9   :  { %v1346_v58 = vpop.f32.mrf.mxu0 }
 0x2eb   :  { %v559_v59 = vpop.f32.mrf.mxu0 }
 0x2ed   :  { %v1349_v60 = vpop.f32.mrf.mxu0 }
 0x2ef   :  { %v569_v61 = vpop.f32.mrf.mxu0 }
 0x2f1   :  { %v1352_v13 = vpop.f32.mrf.mxu0 }
 0x2f2   :  { %1353 = vmatprep.subr.mxu1 %v1352_v13 }
 0x2f3   :  { %v579_v14 = vpop.f32.mrf.mxu0  ;;  %1354 = vmatpush3.msra.mxu1 %v1352_v13 }
 0x2f4   :  { %1355 = vmatprep.subr.mxu1 %v579_v14 }
 0x2f5   :  { %1356 = vmatpush3.msra.mxu1 %v579_v14 }
 0x2f6   :  { %1357 = vmatprep.subr.mxu1 %v1349_v60 }
 0x2f7   :  { %1358 = vmatpush3.msra.mxu1 %v1349_v60 }
 0x2f8   :  { %1359 = vmatprep.subr.mxu1 %v569_v61 }
 0x2f9   :  { %1360 = vmatpush3.msra.mxu1 %v569_v61 }
 0x2fa   :  { %1361 = vmatprep.subr.mxu1 %v1346_v58 }
 0x2fb   :  { %1362 = vmatpush3.msra.mxu1 %v1346_v58 }
 0x2fc   :  { %1363 = vmatprep.subr.mxu1 %v559_v59 }
 0x2fd   :  { %1364 = vmatpush3.msra.mxu1 %v559_v59 }
 0x2fe   :  { %1365 = vmatprep.subr.mxu1 %v1343_v56 }
 0x2ff   :  { %1366 = vmatpush3.msra.mxu1 %v1343_v56 }
 0x300   :  { %1367 = vmatprep.subr.mxu1 %v549_v57 }
 0x301   :  { %1368 = vmatpush3.msra.mxu1 %v549_v57 }
 0x302   :  { %1369 = vmatprep.subr.mxu1 %v1340_v54 }
 0x303   :  { %1370 = vmatpush3.msra.mxu1 %v1340_v54 }
 0x304   :  { %1371 = vmatprep.subr.mxu1 %v539_v55 }
 0x305   :  { %1372 = vmatpush3.msra.mxu1 %v539_v55 }
 0x306   :  { %1373 = vmatprep.subr.mxu1 %v1337_v52 }
 0x307   :  { %1374 = vmatpush3.msra.mxu1 %v1337_v52 }
 0x308   :  { %1375 = vmatprep.subr.mxu1 %v529_v53 }
 0x309   :  { %1376 = vmatpush3.msra.mxu1 %v529_v53 }
 0x30a   :  { %1377 = vmatprep.subr.mxu1 %v1334_v50 }
 0x30b   :  { %1378 = vmatpush3.msra.mxu1 %v1334_v50 }
 0x30c   :  { %1379 = vmatprep.subr.mxu1 %v519_v51 }
 0x30d   :  { %1380 = vmatpush3.msra.mxu1 %v519_v51 }
 0x30e   :  { %1381 = vmatprep.subr.mxu1 %v1331_v48 }
 0x30f   :  { %1382 = vmatpush3.msra.mxu1 %v1331_v48 }
 0x310   :  { %1383 = vmatprep.subr.mxu1 %v509_v49 }
 0x311   :  { %1384 = vmatpush3.msra.mxu1 %v509_v49 }
 0x312   :  { %1386 = vmatmul.mubr.f32.vlgmr.msra.gmra.mxu1 %v1703_v62 }
 0x313   :  { %1388 = vmatprep.mubr.f32.mxu1 %v1705_v63 }
 0x316   :  { %1389 = vmatmul.mubr.f32.gmra.mxu1 %v1709_v0 }
 0x317   :  { %1391 = vmatprep.mubr.f32.mxu1 %v1711_v1 }
 0x31a   :  { %1392 = vmatmul.mubr.f32.gmra.mxu1 %v1715_v2 }
 0x31b   :  { %1394 = vmatprep.mubr.f32.mxu1 %v1717_v3 }
 0x31e   :  { %1395 = vmatmul.mubr.f32.gmra.mxu1 %v1721_v4 }
 0x31f   :  { %1397 = vmatprep.mubr.f32.mxu1 %v1723_v5 }
 0x322   :  { %1398 = vmatmul.mubr.f32.gmra.mxu1 %v1727_v6 }
 0x323   :  { %1400 = vmatprep.mubr.f32.mxu1 %v1729_v7 }
 0x326   :  { %1401 = vmatmul.mubr.f32.gmra.mxu1 %v1733_v8 }
 0x327   :  { %1403 = vmatprep.mubr.f32.mxu1 %v1735_v9 }
 0x32a   :  { %1404 = vmatmul.mubr.f32.gmra.mxu1 %v1739_v10 }
 0x32b   :  { %1406 = vmatprep.mubr.f32.mxu1 %v1741_v11 }
 0x32e   :  { %1407 = vmatmul.mubr.f32.gmra.mxu1 %v1745_v12 }
 0x3d2   :  { %v1387_v62 = vpop.f32.mrf.mxu1 }
 0x3d4   :  { %v654_v63 = vpop.f32.mrf.mxu1 }
 0x3d5   :  { %1441 = vmatprep.mubr.f32.mxu0 %v654_v63 }
 0x3d6   :  { %v1390_v0 = vpop.f32.mrf.mxu1 }
 0x3d8   :  { %v664_v1 = vpop.f32.mrf.mxu1 }
 0x3da   :  { %v1393_v2 = vpop.f32.mrf.mxu1 }
 0x3dc   :  { %v674_v3 = vpop.f32.mrf.mxu1 }
 0x3de   :  { %v1396_v4 = vpop.f32.mrf.mxu1 }
 0x3e0   :  { %v684_v5 = vpop.f32.mrf.mxu1 }
 0x3e2   :  { %v1399_v6 = vpop.f32.mrf.mxu1 }
 0x3e4   :  { %v694_v7 = vpop.f32.mrf.mxu1 }
 0x3e6   :  { %v1402_v8 = vpop.f32.mrf.mxu1 }
 0x3e8   :  { %v704_v15 = vpop.f32.mrf.mxu1 }
 0x3ea   :  { %v1405_v9 = vpop.f32.mrf.mxu1 }
 0x3ec   :  { %v714_v16 = vpop.f32.mrf.mxu1 }
 0x3ee   :  { %v1408_v10 = vpop.f32.mrf.mxu1 }
 0x3ef   :  { %1409 = vmatprep.subr.mxu0 %v1408_v10 }
 0x3f0   :  { %v724_v11 = vpop.f32.mrf.mxu1  ;;  %1410 = vmatpush3.xpose.msra.mxu0 %v1408_v10 }
 0x3f1   :  { %1411 = vmatprep.subr.mxu0 %v724_v11 }
 0x3f4   :  { %1412 = vmatpush3.xpose.msra.mxu0 %v724_v11 }
 0x3f5   :  { %1413 = vmatprep.subr.mxu0 %v1405_v9 }
 0x3f8   :  { %1414 = vmatpush3.xpose.msra.mxu0 %v1405_v9 }
 0x3f9   :  { %1415 = vmatprep.subr.mxu0 %v714_v16 }
 0x3fc   :  { %1416 = vmatpush3.xpose.msra.mxu0 %v714_v16 }
 0x3fd   :  { %1417 = vmatprep.subr.mxu0 %v1402_v8 }
 0x400   :  { %1418 = vmatpush3.xpose.msra.mxu0 %v1402_v8 }
 0x401   :  { %1419 = vmatprep.subr.mxu0 %v704_v15 }
 0x404   :  { %1420 = vmatpush3.xpose.msra.mxu0 %v704_v15 }
 0x405   :  { %1421 = vmatprep.subr.mxu0 %v1399_v6 }
 0x408   :  { %1422 = vmatpush3.xpose.msra.mxu0 %v1399_v6 }
 0x409   :  { %1423 = vmatprep.subr.mxu0 %v694_v7 }
 0x40c   :  { %1424 = vmatpush3.xpose.msra.mxu0 %v694_v7 }
 0x40d   :  { %1425 = vmatprep.subr.mxu0 %v1396_v4 }
 0x410   :  { %1426 = vmatpush3.xpose.msra.mxu0 %v1396_v4 }
 0x411   :  { %1427 = vmatprep.subr.mxu0 %v684_v5 }
 0x414   :  { %1428 = vmatpush3.xpose.msra.mxu0 %v684_v5 }
 0x415   :  { %1429 = vmatprep.subr.mxu0 %v1393_v2 }
 0x418   :  { %1430 = vmatpush3.xpose.msra.mxu0 %v1393_v2 }
 0x419   :  { %1431 = vmatprep.subr.mxu0 %v674_v3 }
 0x41c   :  { %1432 = vmatpush3.xpose.msra.mxu0 %v674_v3 }
 0x41d   :  { %1433 = vmatprep.subr.mxu0 %v1390_v0 }
 0x420   :  { %1434 = vmatpush3.xpose.msra.mxu0 %v1390_v0 }
 0x421   :  { %1435 = vmatprep.subr.mxu0 %v664_v1 }
 0x424   :  { %1436 = vmatpush3.xpose.msra.mxu0 %v664_v1 }
 0x425   :  { %1437 = vmatprep.subr.mxu0 %v1387_v62 }
 0x428   :  { %1438 = vmatpush3.xpose.msra.mxu0 %v1387_v62 }
 0x429   :  { %1439 = vmatprep.subr.mxu0 %v654_v63 }
 0x42c   :  { %1440 = vmatpush3.xpose.msra.mxu0 %v654_v63 }
 0x42f   :  { %1442 = vmatmul.mubr.f32.vlgmr.msra.gmra.mxu0 %v1387_v62 }
 0x430   :  { %1444 = vmatprep.mubr.f32.mxu0 %v664_v1 }
 0x433   :  { %1445 = vmatmul.mubr.f32.gmra.mxu0 %v1390_v0 }
 0x434   :  { %1447 = vmatprep.mubr.f32.mxu0 %v674_v3 }
 0x437   :  { %1448 = vmatmul.mubr.f32.gmra.mxu0 %v1393_v2 }
 0x438   :  { %1450 = vmatprep.mubr.f32.mxu0 %v684_v5 }
 0x43b   :  { %1451 = vmatmul.mubr.f32.gmra.mxu0 %v1396_v4 }
 0x43c   :  { %1453 = vmatprep.mubr.f32.mxu0 %v694_v7 }
 0x43f   :  { %1454 = vmatmul.mubr.f32.gmra.mxu0 %v1399_v6 }
 0x440   :  { %1456 = vmatprep.mubr.f32.mxu0 %v704_v15 }
 0x443   :  { %1457 = vmatmul.mubr.f32.gmra.mxu0 %v1402_v8 }
 0x444   :  { %1459 = vmatprep.mubr.f32.mxu0 %v714_v16 }
 0x447   :  { %1460 = vmatmul.mubr.f32.gmra.mxu0 %v1405_v9 }
 0x448   :  { %1462 = vmatprep.mubr.f32.mxu0 %v724_v11 }
 0x44b   :  { %1463 = vmatmul.mubr.f32.gmra.mxu0 %v1408_v10 }
 0x4ef   :  { %v1443_v12 = vpop.f32.mrf.mxu0 }
 0x4f0   :  { %v1010_v17 = vmul.f32 -1.442695, %v1443_v12 }
 0x4f1   :  { %v799_v18 = vpop.f32.mrf.mxu0 }
 0x4f2   :  { %1472 = vpow2.f32 %v1010_v17  ;;  %v1009_v19 = vmul.f32 -1.442695, %v799_v18 }
 0x4f3   :  { %v1446_v20 = vpop.f32.mrf.mxu0 }
 0x4f4   :  { %1474 = vpow2.f32 %v1009_v19  ;;  %v1012_v21 = vmul.f32 -1.442695, %v1446_v20 }
 0x4f5   :  { %v809_v22 = vpop.f32.mrf.mxu0 }
 0x4f6   :  { %1476 = vpow2.f32 %v1012_v21  ;;  %v1011_v23 = vmul.f32 -1.442695, %v809_v22 }
 0x4f7   :  { %v1449_v24 = vpop.f32.mrf.mxu0 }
 0x4f8   :  { %1478 = vpow2.f32 %v1011_v23  ;;  %v1014_v25 = vmul.f32 -1.442695, %v1449_v24 }
 0x4f9   :  { %v819_v26 = vpop.f32.mrf.mxu0 }
 0x4fa   :  { %1480 = vpow2.f32 %v1014_v25  ;;  %v1013_v27 = vmul.f32 -1.442695, %v819_v26 }
 0x4fb   :  { %v1452_v28 = vpop.f32.mrf.mxu0 }
 0x4fc   :  { %1482 = vpow2.f32 %v1013_v27  ;;  %v1016_v29 = vmul.f32 -1.442695, %v1452_v28 }
 0x4fd   :  { %v829_v30 = vpop.f32.mrf.mxu0 }
 0x4fe   :  { %1484 = vpow2.f32 %v1016_v29  ;;  %v1015_v31 = vmul.f32 -1.442695, %v829_v30 }
 0x4ff   :  { %v1473_v32 = vpop.eup %1472  ;;  %v1455_v33 = vpop.f32.mrf.mxu0 }
 0x500   :  { %v927_v34 = vadd.f32 1.0, %v1473_v32  ;;  %1486 = vpow2.f32 %v1015_v31  ;;  %v1018_v35 = vmul.f32 -1.442695, %v1455_v33 }
 0x501   :  { %v1475_v36 = vpop.eup %1474  ;;  %v839_v37 = vpop.f32.mrf.mxu0 }
 0x502   :  { %1488 = vrcp.f32 %v927_v34  ;;  %v926_v38 = vadd.f32 1.0, %v1475_v36  ;;  %v1017_v39 = vmul.f32 -1.442695, %v839_v37 }
 0x503   :  { %v1477_v40 = vpop.eup %1476  ;;  %1490 = vpow2.f32 %v1018_v35  ;;  %v1458_v41 = vpop.f32.mrf.mxu0 }
 0x504   :  { %1492 = vrcp.f32 %v926_v38  ;;  %v929_v42 = vadd.f32 1.0, %v1477_v40  ;;  %v1020_v43 = vmul.f32 -1.442695, %v1458_v41 }
 0x505   :  { %v1479_v44 = vpop.eup %1478  ;;  %1494 = vpow2.f32 %v1017_v39  ;;  %v849_v45 = vpop.f32.mrf.mxu0 }
 0x506   :  { %1496 = vrcp.f32 %v929_v42  ;;  %v928_v46 = vadd.f32 1.0, %v1479_v44  ;;  %v1019_v47 = vmul.f32 -1.442695, %v849_v45 }
 0x507   :  { %v1481_v48 = vpop.eup %1480  ;;  %1498 = vpow2.f32 %v1020_v43  ;;  %v1461_v49 = vpop.f32.mrf.mxu0 }
 0x508   :  { %1500 = vrcp.f32 %v928_v46  ;;  %v931_v50 = vadd.f32 1.0, %v1481_v48  ;;  %v1022_v51 = vmul.f32 -1.442695, %v1461_v49 }
 0x509   :  { %v1483_v52 = vpop.eup %1482  ;;  %1502 = vpow2.f32 %v1019_v47  ;;  %v859_v53 = vpop.f32.mrf.mxu0 }
 0x50a   :  { %1504 = vrcp.f32 %v931_v50  ;;  %v930_v54 = vadd.f32 1.0, %v1483_v52  ;;  %v1021_v55 = vmul.f32 -1.442695, %v859_v53 }
 0x50b   :  { %v1485_v56 = vpop.eup %1484  ;;  %1506 = vpow2.f32 %v1022_v51  ;;  %v1464_v57 = vpop.f32.mrf.mxu0 }
 0x50c   :  { %1508 = vrcp.f32 %v930_v54  ;;  %v933_v58 = vadd.f32 1.0, %v1485_v56  ;;  %v1024_v59 = vmul.f32 -1.442695, %v1464_v57 }
 0x50d   :  { %v1487_v60 = vpop.eup %1486  ;;  %1510 = vpow2.f32 %v1021_v55  ;;  %v869_v61 = vpop.f32.mrf.mxu0 }
 0x50e   :  { %1512 = vrcp.f32 %v933_v58  ;;  %v932_v13 = vadd.f32 1.0, %v1487_v60  ;;  %v1023_v14 = vmul.f32 -1.442695, %v869_v61 }
 0x50f   :  { %v1489_v62 = vpop.eup %1488  ;;  %1514 = vpow2.f32 %v1024_v59 }
 0x510   :  { %v1491_v63 = vpop.eup %1490  ;;  %975 = vst [vmem:[#allocation10 + $0x8] sm:$0xff] %v1489_v62  ;;  %1516 = vrcp.f32 %v932_v13 }
 0x511   :  { %v1493_v0 = vpop.eup %1492  ;;  %v935_v1 = vadd.f32 1.0, %v1491_v63  ;;  %1518 = vpow2.f32 %v1023_v14 }
 0x512   :  { %v1495_v2 = vpop.eup %1494  ;;  %974 = vst [vmem:[#allocation10] sm:$0xff] %v1493_v0 }
 0x513   :  { %v1497_v3 = vpop.eup %1496  ;;  %1520 = vrcp.f32 %v935_v1  ;;  %v934_v4 = vadd.f32 1.0, %v1495_v2 }
 0x514   :  { %v1499_v5 = vpop.eup %1498  ;;  %977 = vst [vmem:[#allocation10 + $0x18] sm:$0xff] %v1497_v3 }
 0x515   :  { %v1501_v6 = vpop.eup %1500  ;;  %1522 = vrcp.f32 %v934_v4  ;;  %v937_v7 = vadd.f32 1.0, %v1499_v5 }
 0x516   :  { %v1503_v8 = vpop.eup %1502  ;;  %976 = vst [vmem:[#allocation10 + $0x10] sm:$0xff] %v1501_v6 }
 0x517   :  { %v1505_v15 = vpop.eup %1504  ;;  %1524 = vrcp.f32 %v937_v7  ;;  %v936_v9 = vadd.f32 1.0, %v1503_v8 }
 0x518   :  { %v1507_v16 = vpop.eup %1506  ;;  %979 = vst [vmem:[#allocation10 + $0x28] sm:$0xff] %v1505_v15 }
 0x519   :  { %v1509_v10 = vpop.eup %1508  ;;  %1526 = vrcp.f32 %v936_v9  ;;  %v939_v11 = vadd.f32 1.0, %v1507_v16 }
 0x51a   :  { %v1511_v12 = vpop.eup %1510  ;;  %978 = vst [vmem:[#allocation10 + $0x20] sm:$0xff] %v1509_v10 }
 0x51b   :  { %v1513_v17 = vpop.eup %1512  ;;  %1528 = vrcp.f32 %v939_v11  ;;  %v938_v18 = vadd.f32 1.0, %v1511_v12 }
 0x51c   :  { %v1515_v19 = vpop.eup %1514  ;;  %981 = vst [vmem:[#allocation10 + $0x38] sm:$0xff] %v1513_v17 }
 0x51d   :  { %v1517_v20 = vpop.eup %1516  ;;  %1530 = vrcp.f32 %v938_v18  ;;  %v941_v21 = vadd.f32 1.0, %v1515_v19 }
 0x51e   :  { %v1519_v22 = vpop.eup %1518  ;;  %980 = vst [vmem:[#allocation10 + $0x30] sm:$0xff] %v1517_v20 }
 0x51f   :  { %1532 = vrcp.f32 %v941_v21  ;;  %v940_v23 = vadd.f32 1.0, %v1519_v22 }
 0x520   :  { %v1521_v24 = vpop.eup %1520 }
 0x521   :  { %983 = vst [vmem:[#allocation10 + $0x48] sm:$0xff] %v1521_v24  ;;  %1534 = vrcp.f32 %v940_v23 }
 0x522   :  { %v1523_v25 = vpop.eup %1522 }
 0x523   :  { %982 = vst [vmem:[#allocation10 + $0x40] sm:$0xff] %v1523_v25 }
 0x524   :  { %v1525_v26 = vpop.eup %1524 }
 0x525   :  { %985 = vst [vmem:[#allocation10 + $0x58] sm:$0xff] %v1525_v26 }
 0x526   :  { %v1527_v27 = vpop.eup %1526 }
 0x527   :  { %984 = vst [vmem:[#allocation10 + $0x50] sm:$0xff] %v1527_v27 }
 0x528   :  { %v1529_v28 = vpop.eup %1528 }
 0x529   :  { %987 = vst [vmem:[#allocation10 + $0x68] sm:$0xff] %v1529_v28 }
 0x52a   :  { %v1531_v29 = vpop.eup %1530 }
 0x52b   :  { %986 = vst [vmem:[#allocation10 + $0x60] sm:$0xff] %v1531_v29 }
 0x52c   :  { %v1533_v30 = vpop.eup %1532 }
 0x52d   :  { %989 = vst [vmem:[#allocation10 + $0x78] sm:$0xff] %v1533_v30 }
 0x52e   :  { %v1535_v31 = vpop.eup %1534 }
 0x52f   :  { %988 = vst [vmem:[#allocation10 + $0x70] sm:$0xff] %v1535_v31 }
 0x530   :  { %1627 = shalt.err (!%p1624_p10)
}
 0x531   :  { %1001 = dma.vmem_to_hbm [thread:$0]  %s996_s3, 2048, %s1774_s4, [#allocation4], %s1646_s20, %s1646_s20, %s1647_s21  }
 0x532   :  { %1642 = dma.done.wait [#allocation4], 2048  }
 0x533   :  { %1643 = vsyncadd [#allocation4], 4294965248 }
 0x534   :  { %1005 = vsyncpa [#allocation3], 1 }
 0x535   :  { %1006 = vsyncpa [#allocation6], 1 }
 0x536   :  { %1007 = vsyncpa [#allocation9], 1 }
 0x537   :  { %1008 = vsyncpa [#allocation4], 1 }

</bundles_post_ra>
